<compile_context>
chip_gen: v7x
topology: tpu7x:2x2x1
jax: 0.10.0
libtpu: 0.0.40
codegen_flags: <defaults>
</compile_context>

<pallas_src>
import jax
import jax.numpy as jnp
from jax.experimental import pallas as pl
from jax.experimental.pallas import tpu as pltpu

_SQRT_2_OVER_PI = 0.7978845608028654
_C1 = _SQRT_2_OVER_PI * 0.044715  # Horner-folded cubic coefficient


def _gelu_tanh(v1):
    # 0.5*v1*(1 + tanh(sqrt(2/pi)*(v1 + 0.044715*v1^3))), Horner form.
    t = v1 * v1
    arg = v1 * (_SQRT_2_OVER_PI + _C1 * t)
    return (0.5 * v1) * (1.0 + jnp.tanh(arg))  # tanh -> EUP (free slot)


def _conv1x1_gelu_kernel(w_ref, b_ref, x_ref, o_ref):
    # scalar conv params live in SMEM
    w = w_ref[0, 0]
    b = b_ref[0, 0]
    v1 = x_ref[...] * w + b          # 1x1 conv, 1 -> 1 channel
    o_ref[...] = _gelu_tanh(v1)


def _device_kind():
    try:
        return jax.devices()[0].device_kind.lower()
    except Exception:
        return ""


def conv1x1_gelu(x_nchw, weight, bias, *, tile_rows=None,
                 small_fast_path_bytes=1 << 20):
    """x_nchw: (N, 1, H, W) float32; weight: (1,1,1,1); bias: (1,)."""
    N, C, H, W = x_nchw.shape
    assert C == 1, "Conv2d(1,1,1) expects a single input channel"

    w = jnp.asarray(weight, jnp.float32).reshape(())
    b = jnp.asarray(bias, jnp.float32).reshape(())
    total = N * C * H * W

    # Small-input fast path: fixed pallas_call overhead dominates tiny tensors.
    if total * x_nchw.dtype.itemsize < small_fast_path_bytes:
        return _gelu_tanh(x_nchw * w + b).astype(x_nchw.dtype)

    # Lane-dense slab: pick the widest L (multiple of 128) that divides total so
    # the flatten/reshape is a zero-copy view; pad only as a rare fallback.
    flat = x_nchw.reshape(-1)
    L = None
    for cand in (2048, 1024, 512, 256, 128):
        if total % cand == 0:
            L = cand
            break
    if L is None:
        L = 128
        padded_total = pl.cdiv(total, L) * L
        flat = jnp.pad(flat, (0, padded_total - total))  # rare: odd sizes only
    else:
        padded_total = total
    rows = padded_total // L
    x2d = flat.reshape(rows, L)

    kind = _device_kind()
    is_v7 = "v7" in kind
    # ~4 MiB f32 tiles on v7x (3.2 TB/s HBM, amortize per-step overhead),
    # ~2 MiB elsewhere (double-buffered in+out stays under v5e's 16 MiB scoped VMEM).
    target_tile_elems = (1 << 20) if is_v7 else (1 << 19)
    if tile_rows is None:
        tile_rows = max(8, (target_tile_elems // L) // 8 * 8)
    assert tile_rows % 8 == 0 and tile_rows >= 8, "tile_rows must be a multiple of 8"
    assert L % 128 == 0

    if rows <= tile_rows:
        tile_r = rows        # block equals full dim -> always legal
    else:
        tile_r = tile_rows   # multiple of 8 -> legal; last block may be partial
    num_tiles = pl.cdiv(rows, tile_r)

    # v7x has 2 TensorCores: only CORE_PARALLEL actually shards the grid across them.
    if is_v7 and num_tiles >= 2:
        dim_sem = (pltpu.CORE_PARALLEL,)
    else:
        dim_sem = ("parallel",)

    w_smem = w.reshape(1, 1)
    b_smem = b.reshape(1, 1)

    out2d = pl.pallas_call(
        _conv1x1_gelu_kernel,
        out_shape=jax.ShapeDtypeStruct((rows, L), x2d.dtype),
        grid=(num_tiles,),
        in_specs=[
            pl.BlockSpec(memory_space=pltpu.MemorySpace.SMEM),   # weight scalar
            pl.BlockSpec(memory_space=pltpu.MemorySpace.SMEM),   # bias scalar
            pl.BlockSpec((tile_r, L), lambda i: (i, 0)),         # x tile
        ],
        out_specs=pl.BlockSpec((tile_r, L), lambda i: (i, 0)),
        compiler_params=pltpu.CompilerParams(dimension_semantics=dim_sem),
        cost_estimate=pl.CostEstimate(
            flops=10 * padded_total,
            transcendentals=padded_total,
            bytes_accessed=8 * padded_total),
    )(w_smem, b_smem, x2d)

    if padded_total != total:
        out_flat = out2d.reshape(-1)[:total]   # drop padded tail (rare path)
    else:
        out_flat = out2d.reshape(-1)           # free reshape, no copy
    return out_flat.reshape(N, C, H, W)


def reference(x_nchw, weight, bias):
    # literal op sequence from the PyTorch module
    w = jnp.asarray(weight, jnp.float32).reshape(())
    b = jnp.asarray(bias, jnp.float32).reshape(())
    v1 = x_nchw * w + b
    v2 = v1 * 0.5
    v3 = v1 * v1
    v4 = v3 * v1
    v5 = v4 * 0.044715
    v6 = v1 + v5
    v7 = v6 * 0.7978845608028654
    v8 = jnp.tanh(v7)
    v9 = v8 + 1.0
    return v2 * v9


if __name__ == "__main__":
    key = jax.random.PRNGKey(0)
    kw, kb, k1, k2, k3, k4 = jax.random.split(key, 6)

    # deterministic synthetic conv parameters (shapes from nn.Conv2d(1,1,1))
    weight = jax.random.normal(kw, (1, 1, 1, 1), dtype=jnp.float32)
    bias = jax.random.normal(kb, (1,), dtype=jnp.float32)

    # 1) small shape, default call (exercises the small-input fast path)
    x = jax.random.normal(k1, (2, 1, 16, 16), dtype=jnp.float32)
    out = conv1x1_gelu(x, weight, bias)
    jax.block_until_ready(out)
    assert out.shape == (2, 1, 16, 16)
    assert jnp.allclose(out, reference(x, weight, bias), atol=1e-5, rtol=1e-5)

    # 2) Pallas path: zero-copy adaptive lane width (total=6400 -> L=256, 1 tile)
    x2 = jax.random.normal(k2, (1, 1, 100, 64), dtype=jnp.float32)
    out2 = conv1x1_gelu(x2, weight, bias, small_fast_path_bytes=0)
    jax.block_until_ready(out2)
    assert out2.shape == (1, 1, 100, 64)
    assert jnp.allclose(out2, reference(x2, weight, bias), atol=1e-5, rtol=1e-5)

    # 3) Pallas path: multi-step grid with a masked partial last row block
    #    (total=13312 -> L=1024, rows=13, tile_rows=8 -> 2 grid steps)
    x3 = jax.random.normal(k3, (1, 1, 104, 128), dtype=jnp.float32)
    out3 = conv1x1_gelu(x3, weight, bias, tile_rows=8, small_fast_path_bytes=0)
    jax.block_until_ready(out3)
    assert out3.shape == (1, 1, 104, 128)
    assert jnp.allclose(out3, reference(x3, weight, bias), atol=1e-5, rtol=1e-5)

    # 4) Pallas path: odd size exercising the rare pad fallback (total=117)
    x4 = jax.random.normal(k4, (1, 1, 9, 13), dtype=jnp.float32)
    out4 = conv1x1_gelu(x4, weight, bias, small_fast_path_bytes=0)
    jax.block_until_ready(out4)
    assert out4.shape == (1, 1, 9, 13)
    assert jnp.allclose(out4, reference(x4, weight, bias), atol=1e-5, rtol=1e-5)

    print("KERNEL_OK")
</pallas_src>

<mosaic_0001>
module attributes {stable_mosaic.version = 11 : i64} {
  func.func @_conv1x1_gelu_kernel(%arg0: i32, %arg1: memref<1x1xf32, #tpu.memory_space<smem>>, %arg2: memref<1x1xf32, #tpu.memory_space<smem>>, %arg3: memref<25x256xf32, #tpu.memory_space<vmem>>, %arg4: memref<25x256xf32, #tpu.memory_space<vmem>>) attributes {dimension_semantics = [#tpu.dimension_semantics<parallel>], iteration_bounds = array<i64: 1>, scalar_prefetch = 0 : i64, scratch_operands = 0 : i64, tpu.core_type = #tpu.core_type<tc>, window_params = [{transform_indices = @transform_0, window_bounds = array<i64: 1, 1>}, {transform_indices = @transform_1, window_bounds = array<i64: 1, 1>}, {transform_indices = @transform_2, window_bounds = array<i64: 25, 256>}, {transform_indices = @transform_3, window_bounds = array<i64: 25, 256>}]} {
    %c0 = arith.constant 0 : index
    %c0_0 = arith.constant 0 : index
    %0 = memref.load %arg1[%c0, %c0_0] : memref<1x1xf32, #tpu.memory_space<smem>>
    %c0_1 = arith.constant 0 : index
    %c0_2 = arith.constant 0 : index
    %1 = memref.load %arg2[%c0_1, %c0_2] : memref<1x1xf32, #tpu.memory_space<smem>>
    %c0_3 = arith.constant 0 : index
    %c0_4 = arith.constant 0 : index
    %2 = vector.load %arg3[%c0_3, %c0_4] : memref<25x256xf32, #tpu.memory_space<vmem>>, vector<25x256xf32>
    %3 = vector.broadcast %0 : f32 to vector<25x256xf32>
    %4 = arith.mulf %2, %3 : vector<25x256xf32>
    %5 = vector.broadcast %1 : f32 to vector<25x256xf32>
    %6 = arith.addf %4, %5 : vector<25x256xf32>
    %7 = arith.mulf %6, %6 : vector<25x256xf32>
    %cst = arith.constant 0.0356774069 : f32
    %8 = vector.broadcast %cst : f32 to vector<25x256xf32>
    %9 = arith.mulf %8, %7 : vector<25x256xf32>
    %cst_5 = arith.constant 0.797884583 : f32
    %10 = vector.broadcast %cst_5 : f32 to vector<25x256xf32>
    %11 = arith.addf %10, %9 : vector<25x256xf32>
    %12 = arith.mulf %6, %11 : vector<25x256xf32>
    %cst_6 = arith.constant 5.000000e-01 : f32
    %13 = vector.broadcast %cst_6 : f32 to vector<25x256xf32>
    %14 = arith.mulf %13, %6 : vector<25x256xf32>
    %15 = math.tanh %12 : vector<25x256xf32>
    %cst_7 = arith.constant 1.000000e+00 : f32
    %16 = vector.broadcast %cst_7 : f32 to vector<25x256xf32>
    %17 = arith.addf %16, %15 : vector<25x256xf32>
    %18 = arith.mulf %14, %17 : vector<25x256xf32>
    %c0_8 = arith.constant 0 : index
    %c0_9 = arith.constant 0 : index
    %19 = vector.load %arg4[%c0_8, %c0_9] : memref<25x256xf32, #tpu.memory_space<vmem>>, vector<25x256xf32>
    tpu.vector_store %arg4[%c0_8, %c0_9], %18 {strides = array<i32>} : memref<25x256xf32, #tpu.memory_space<vmem>>, vector<25x256xf32>,
    return
  }
  func.func @transform_0(%arg0: i32) -> (i32, i32) {
    %c0_i32 = arith.constant 0 : i32
    %c0_i32_0 = arith.constant 0 : i32
    %c0_i32_1 = arith.constant 0 : i32
    return %c0_i32, %c0_i32_0 : i32, i32
  }
  func.func @transform_1(%arg0: i32) -> (i32, i32) {
    %c0_i32 = arith.constant 0 : i32
    %c0_i32_0 = arith.constant 0 : i32
    %c0_i32_1 = arith.constant 0 : i32
    return %c0_i32, %c0_i32_0 : i32, i32
  }
  func.func @transform_2(%arg0: i32) -> (i32, i32) {
    %c0_i32 = arith.constant 0 : i32
    %c0_i32_0 = arith.constant 0 : i32
    return %arg0, %c0_i32 : i32, i32
  }
  func.func @transform_3(%arg0: i32) -> (i32, i32) {
    %c0_i32 = arith.constant 0 : i32
    %c0_i32_0 = arith.constant 0 : i32
    return %arg0, %c0_i32 : i32, i32
  }
}

</mosaic_0001>

<bundles_post_ra>
// kernel: tpu_custom_call.1
= control target key start
LH: loop header
LB: loop body
LE: loop exit
PB: predicated region body
PF: predicated region fallthrough
CT: control target
= control target key end

     0   :  { %10 = vsyncpa [#allocation5], 0  ;;  %s276_s0 = inlined_call_operand.<no memory space> [shape: f32[1,1], index: 0, kind: input, shape index: {}]   ;;  %s277_s1 = inlined_call_operand.<no memory space> [shape: f32[1,1], index: 1, kind: input, shape index: {}]   ;;  %s278_s2 = inlined_call_operand.hbm [shape: f32[25,256], index: 2, kind: input, shape index: {}]   ;;  %s279_s3 = inlined_call_operand.hbm [shape: f32[25,256], index: 3, kind: output, shape index: {}]  }
   0x1   :  { %11 = vsyncpa [#allocation6], 0  ;;  %s216_s12 = smov [#allocation4]   ;;  %s168_s16 = scalar_lea.hbm %s278_s2, 1024 }
   0x2   :  { %s21_s13 = sshll.u32 %s216_s12, 4  ;;  %p169_p0 = scmp.ne.s32.totalorder %s278_s2, %s168_s16  ;;  %s22_s13 = int_to_ptr.vmem [resolvable:$true] %s21_s13 }
   0x3   :  { %p172_p1 = scmp.lt.u32.totalorder %s168_s16, %s278_s2 }
   0x5   :  { %p174_p2 = pnand %p172_p1, %p169_p0 }
   0x7   :  { %177 = shalt.err (!%p174_p2)
}
   0x8   :  { %s178_s21 = scalar_lea.vmem %s22_s13, 1024  ;;  %p183_p4 = scmp.lt.s32.totalorder %s22_s13, %s22_s13 }
   0x9   :  { %p179_p3 = scmp.ne.s32.totalorder %s22_s13, %s178_s21  ;;  %p184_p5 = scmp.lt.s32.totalorder %s178_s21, %s178_s21 }
   0xb   :  { %p185_p6 = por %p184_p5, %p183_p4 }
   0xd   :  { %p186_p7 = pnand %p185_p6, %p179_p3 }
   0xf   :  { %189 = shalt.err (!%p186_p7)
}
  0x10   :  { %s217_s22 = smov 256   ;;  %s218_s23 = smov 16  }
  0x11   :  { %27 = dma.hbm_to_vmem [thread:$0]  %s278_s2, 1024, %s22_s13, [#allocation5], %s217_s22, %s217_s22, %s218_s23  }
  0x12   :  { %212 = dma.done.wait [#allocation5], 1024  }
  0x13   :  { %213 = vsyncadd [#allocation5], 4294966272  ;;  %v41_v0 = vstv %s276_s0  ;;  %v33_v1 = vld [vmem:[#allocation4] sm:$0xff]  ;;  %v50_v2 = vstv %s277_s1  ;;  %v34_v3 = vld [vmem:[#allocation4 + $0x8] sm:$0xff]  ;;  %s219_s0 = smov [#allocation7]  }
  0x14   :  { %v35_v4 = vld [vmem:[#allocation4 + $0x10] sm:$0xff]  ;;  %v42_v5 = vmul.f32 %v41_v0, %v33_v1  ;;  %v43_v6 = vmul.f32 %v41_v0, %v34_v3  ;;  %v36_v8 = vld [vmem:[#allocation4 + $0x18] sm:$0xff]  ;;  %v37_v9 = vld [vmem:[#allocation4 + $0x20] sm:$0xff]  ;;  %s136_s1 = sshll.u32 %s219_s0, 4  ;;  %s137_s1 = int_to_ptr.vmem [resolvable:$true] %s136_s1 }
  0x15   :  { %v44_v7 = vmul.f32 %v41_v0, %v35_v4  ;;  %v38_v10 = vld [vmem:[#allocation4 + $0x28] sm:$0xff]  ;;  %v45_v11 = vmul.f32 %v41_v0, %v36_v8  ;;  %v46_v12 = vmul.f32 %v41_v0, %v37_v9  ;;  %v39_v14 = vld [vmem:[#allocation4 + $0x30] sm:$0x1]  ;;  %v40_v18 = vld [vmem:[#allocation4 + $0x38] sm:$0x1]  ;;  %s190_s2 = scalar_lea.vmem %s137_s1, 1024  ;;  %p195_p9 = scmp.lt.s32.totalorder %s137_s1, %s137_s1 }
  0x16   :  { %v47_v13 = vmul.f32 %v41_v0, %v38_v10  ;;  %v51_v15 = vadd.f32 %v50_v2, %v42_v5  ;;  %v52_v16 = vadd.f32 %v50_v2, %v43_v6  ;;  %v48_v24 = vmul.f32 %v41_v0, %v39_v14  ;;  %p191_p8 = scmp.ne.s32.totalorder %s137_s1, %s190_s2  ;;  %p196_p10 = scmp.lt.s32.totalorder %s190_s2, %s190_s2 }
  0x17   :  { %v53_v17 = vadd.f32 %v50_v2, %v44_v7  ;;  %v54_v19 = vadd.f32 %v50_v2, %v45_v11  ;;  %v55_v20 = vadd.f32 %v50_v2, %v46_v12  ;;  %v49_v27 = vmul.f32 %v41_v0, %v40_v18 }
  0x18   :  { %v56_v21 = vadd.f32 %v50_v2, %v47_v13  ;;  %v59_v22 = vmul.f32 %v51_v15, %v51_v15  ;;  %v60_v23 = vmul.f32 %v52_v16, %v52_v16  ;;  %v57_v37 = vadd.f32 %v50_v2, %v48_v24  ;;  %p197_p11 = por %p196_p10, %p195_p9 }
  0x19   :  { %v61_v25 = vmul.f32 %v53_v17, %v53_v17  ;;  %v62_v26 = vmul.f32 %v54_v19, %v54_v19  ;;  %v63_v30 = vmul.f32 %v55_v20, %v55_v20  ;;  %v58_v41 = vadd.f32 %v50_v2, %v49_v27 }
  0x1a   :  { %v67_v28 = vmul.f32 0.035677407, %v59_v22  ;;  %v68_v29 = vmul.f32 0.035677407, %v60_v23  ;;  %v64_v33 = vmul.f32 %v56_v21, %v56_v21  ;;  %v65_v45 = vmul.f32 %v57_v37, %v57_v37  ;;  %p198_p12 = pnand %p197_p11, %p191_p8 }
  0x1b   :  { %v69_v31 = vmul.f32 0.035677407, %v61_v25  ;;  %v70_v32 = vmul.f32 0.035677407, %v62_v26  ;;  %v71_v36 = vmul.f32 0.035677407, %v63_v30  ;;  %v66_v51 = vmul.f32 %v58_v41, %v58_v41 }
  0x1c   :  { %v75_v34 = vadd.f32 0.7978846, %v67_v28  ;;  %v76_v35 = vadd.f32 0.7978846, %v68_v29  ;;  %v72_v40 = vmul.f32 0.035677407, %v64_v33 }
  0x1d   :  { %v77_v38 = vadd.f32 0.7978846, %v69_v31  ;;  %v78_v39 = vadd.f32 0.7978846, %v70_v32  ;;  %v79_v44 = vadd.f32 0.7978846, %v71_v36 }
  0x1e   :  { %v83_v42 = vmul.f32 %v75_v34, %v51_v15  ;;  %v84_v43 = vmul.f32 %v76_v35, %v52_v16  ;;  %v80_v48 = vadd.f32 0.7978846, %v72_v40  ;;  %v73_v50 = vmul.f32 0.035677407, %v65_v45 }
  0x1f   :  { %v85_v46 = vmul.f32 %v77_v38, %v53_v17  ;;  %v86_v47 = vmul.f32 %v78_v39, %v54_v19  ;;  %v87_v49 = vmul.f32 %v79_v44, %v55_v20  ;;  %v74_v54 = vmul.f32 0.035677407, %v66_v51 }
  0x20   :  { %152 = vtanh.f32 %v83_v42  ;;  %v88_v52 = vmul.f32 %v80_v48, %v56_v21  ;;  %v81_v53 = vadd.f32 0.7978846, %v73_v50  ;;  %v91_v58 = vmul.f32 0.5, %v51_v15 }
  0x21   :  { %154 = vtanh.f32 %v84_v43  ;;  %v82_v56 = vadd.f32 0.7978846, %v74_v54  ;;  %v92_v60 = vmul.f32 0.5, %v52_v16  ;;  %v93_v63 = vmul.f32 0.5, %v53_v17 }
  0x22   :  { %156 = vtanh.f32 %v85_v46  ;;  %v89_v55 = vmul.f32 %v81_v53, %v57_v37  ;;  %v94_v2 = vmul.f32 0.5, %v54_v19  ;;  %v95_v6 = vmul.f32 0.5, %v55_v20 }
  0x23   :  { %158 = vtanh.f32 %v86_v47  ;;  %v90_v57 = vmul.f32 %v82_v56, %v58_v41  ;;  %v96_v10 = vmul.f32 0.5, %v56_v21  ;;  %v97_v14 = vmul.f32 0.5, %v57_v37 }
  0x24   :  { %160 = vtanh.f32 %v87_v49  ;;  %v98_v22 = vmul.f32 0.5, %v58_v41 }
  0x25   :  { %162 = vtanh.f32 %v88_v52 }
  0x26   :  { %164 = vtanh.f32 %v89_v55 }
  0x27   :  { %166 = vtanh.f32 %v90_v57 }
  0x2a   :  { %v153_v59 = vpop.eup %152 }
  0x2b   :  { %v155_v61 = vpop.eup %154  ;;  %v107_v62 = vadd.f32 1.0, %v153_v59 }
  0x2c   :  { %v157_v0 = vpop.eup %156  ;;  %v108_v1 = vadd.f32 1.0, %v155_v61 }
  0x2d   :  { %v159_v3 = vpop.eup %158  ;;  %v115_v4 = vmul.f32 %v107_v62, %v91_v58  ;;  %v109_v5 = vadd.f32 1.0, %v157_v0 }
  0x2e   :  { %v161_v7 = vpop.eup %160  ;;  %v116_v8 = vmul.f32 %v108_v1, %v92_v60  ;;  %v110_v9 = vadd.f32 1.0, %v159_v3 }
  0x2f   :  { %v163_v11 = vpop.eup %162  ;;  %123 = vst [vmem:[#allocation7] sm:$0xff] %v115_v4  ;;  %v117_v12 = vmul.f32 %v109_v5, %v93_v63  ;;  %v111_v13 = vadd.f32 1.0, %v161_v7 }
  0x30   :  { %v165_v15 = vpop.eup %164  ;;  %124 = vst [vmem:[#allocation7 + $0x8] sm:$0xff] %v116_v8  ;;  %v118_v16 = vmul.f32 %v110_v9, %v94_v2  ;;  %v112_v17 = vadd.f32 1.0, %v163_v11 }
  0x31   :  { %125 = vst [vmem:[#allocation7 + $0x10] sm:$0xff] %v117_v12  ;;  %v119_v18 = vmul.f32 %v111_v13, %v95_v6  ;;  %v113_v19 = vadd.f32 1.0, %v165_v15  ;;  %v167_v23 = vpop.eup %166 }
  0x32   :  { %126 = vst [vmem:[#allocation7 + $0x18] sm:$0xff] %v118_v16  ;;  %v120_v20 = vmul.f32 %v112_v17, %v96_v10  ;;  %v114_v24 = vadd.f32 1.0, %v167_v23 }
  0x33   :  { %127 = vst [vmem:[#allocation7 + $0x20] sm:$0xff] %v119_v18  ;;  %v121_v21 = vmul.f32 %v113_v19, %v97_v14 }
  0x34   :  { %128 = vst [vmem:[#allocation7 + $0x28] sm:$0xff] %v120_v20  ;;  %v122_v25 = vmul.f32 %v114_v24, %v98_v22 }
  0x35   :  { %129 = vst [vmem:[#allocation7 + $0x30] sm:$0x1] %v121_v21 }
  0x36   :  { %130 = vst [vmem:[#allocation7 + $0x38] sm:$0x1] %v122_v25 }
  0x37   :  { %201 = shalt.err (!%p198_p12)
}
  0x38   :  { %s202_s5 = scalar_lea.hbm %s279_s3, 1024 }
  0x39   :  { %p203_p13 = scmp.ne.s32.totalorder %s279_s3, %s202_s5  ;;  %p206_p0 = scmp.lt.u32.totalorder %s202_s5, %s279_s3 }
  0x3b   :  { %p208_p1 = pnand %p206_p0, %p203_p13 }
  0x3d   :  { %211 = shalt.err (!%p208_p1)
}
  0x3e   :  { %142 = dma.vmem_to_hbm [thread:$0]  %s137_s1, 1024, %s279_s3, [#allocation6], %s217_s22, %s217_s22, %s218_s23  }
  0x3f   :  { %214 = dma.done.wait [#allocation6], 1024  }
  0x40   :  { %215 = vsyncadd [#allocation6], 4294966272 }
  0x41   :  { %146 = vsyncpa [#allocation5], 1 }
  0x42   :  { %147 = vsyncpa [#allocation6], 1 }

</bundles_post_ra>
